<compile_context>
chip_gen: v7x
topology: tpu7x:2x2x1
jax: 0.10.0
libtpu: 0.0.40
codegen_flags: <defaults>
</compile_context>

<pallas_src>
import functools
import math

import jax
import jax.numpy as jnp
from jax.experimental import pallas as pl
from jax.experimental.pallas import tpu as pltpu

LANE = 128  # lane width of a TPU vreg


# ---------------------------------------------------------------------------
# Forward: identity (input * 1.0) as a single HBM->HBM DMA.
# ---------------------------------------------------------------------------
def _grl_fwd_copy_kernel(x_hbm_ref, o_hbm_ref, sem):
    copy = pltpu.make_async_copy(x_hbm_ref, o_hbm_ref, sem)
    copy.start()
    copy.wait()


def grl_forward(x):
    """GRL forward pass: out = x * 1.0 (exact identity copy)."""
    nbytes = int(x.size) * x.dtype.itemsize
    return pl.pallas_call(
        _grl_fwd_copy_kernel,
        out_shape=jax.ShapeDtypeStruct(x.shape, x.dtype),
        in_specs=[pl.BlockSpec(memory_space=pl.ANY)],
        out_specs=pl.BlockSpec(memory_space=pl.ANY),
        scratch_shapes=[pltpu.SemaphoreType.DMA],
        cost_estimate=pl.CostEstimate(
            flops=0, transcendentals=0, bytes_accessed=2 * nbytes),
    )(x)


# ---------------------------------------------------------------------------
# Backward: gradient reversal, out = (-coeff) * g, tiled elementwise kernel.
# ---------------------------------------------------------------------------
def _grl_bwd_scale_kernel(g_ref, o_ref, *, neg_coeff):
    o_ref[...] = g_ref[...] * jnp.asarray(neg_coeff, dtype=g_ref.dtype)


def _sublane_packing(dtype):
    # Min sublane multiple: 8 for 4-byte, 16 for 2-byte, 32 for 1-byte dtypes.
    return 8 * max(1, 4 // jnp.dtype(dtype).itemsize)


def grl_backward_scale(g, coeff):
    """Returns (-coeff) * g via a lane-dense tiled Pallas kernel."""
    neg_coeff = -float(coeff)
    kernel = functools.partial(_grl_bwd_scale_kernel, neg_coeff=neg_coeff)
    total = int(g.size)
    dtype = g.dtype
    nbytes = total * dtype.itemsize
    cost = pl.CostEstimate(flops=total, transcendentals=0,
                           bytes_accessed=2 * nbytes)

    if total % LANE != 0:
        # Rare ragged fallback: single whole-array block (block shape equal
        # to the full array dims is always a legal layout).
        return pl.pallas_call(
            kernel,
            out_shape=jax.ShapeDtypeStruct(g.shape, dtype),
            cost_estimate=cost,
        )(g)

    rows = total // LANE
    packing = _sublane_packing(dtype)
    # ~2 MiB per block -> ~8 MiB with double-buffered in+out: comfortably
    # inside v5e's 16 MiB default scoped VMEM, big enough to amortize the
    # per-grid-step overhead on v6e/v7x.
    target_rows = (2 * 1024 * 1024) // (LANE * dtype.itemsize)
    if rows <= packing:
        tm = rows                       # full-extent block: always legal
    else:
        tm = min(rows, target_rows)
        tm = max(packing, (tm // packing) * packing)
    grid = pl.cdiv(rows, tm)

    g2d = g.reshape(rows, LANE)         # lane-dense view, no padding needed
    out2d = pl.pallas_call(
        kernel,
        out_shape=jax.ShapeDtypeStruct((rows, LANE), dtype),
        grid_spec=pltpu.PrefetchScalarGridSpec(
            num_scalar_prefetch=0,
            grid=(grid,),
            in_specs=[pl.BlockSpec((tm, LANE), lambda i: (i, 0))],
            out_specs=pl.BlockSpec((tm, LANE), lambda i: (i, 0)),
        ),
        compiler_params=pltpu.CompilerParams(
            dimension_semantics=("parallel",)),
        cost_estimate=cost,
    )(g2d)
    return out2d.reshape(g.shape)


# ---------------------------------------------------------------------------
# custom_vjp wiring + module-like wrapper (host-side iter_num / coeff ramp).
# ---------------------------------------------------------------------------
def _make_grl_fn(coeff):
    @jax.custom_vjp
    def grl_fn(x):
        return grl_forward(x)

    def fwd(x):
        return grl_forward(x), None

    def bwd(_, g):
        return (grl_backward_scale(g, coeff),)

    grl_fn.defvjp(fwd, bwd)
    return grl_fn


class GRL:
    """Mirrors the PyTorch GRL module (Python-side iter_num / coeff schedule)."""

    def __init__(self):
        self.iter_num = 0
        self.alpha = 10
        self.low = 0.0
        self.high = 1.0
        self.max_iter = 4000

    def coeff(self):
        return float(
            2.0 * (self.high - self.low)
            / (1.0 + math.exp(-self.alpha * self.iter_num / self.max_iter))
            - (self.high - self.low) + self.low)

    def __call__(self, x):
        self.iter_num += 1
        return _make_grl_fn(self.coeff())(x)


if __name__ == "__main__":
    key = jax.random.PRNGKey(0)
    # Typical GRL usage: a small feature map handed to a domain classifier.
    x = jax.random.normal(key, (2, 4, 16, 16), jnp.float32)

    grl = GRL()

    # Forward: exact identity.
    out = jax.block_until_ready(grl(x))
    assert out.shape == x.shape
    assert out.dtype == x.dtype
    assert jnp.array_equal(out, x)

    # Backward: reversed gradient scaled by the iter_num-dependent coeff.
    y, vjp_fn = jax.vjp(grl, x)            # increments iter_num
    g = jax.random.normal(jax.random.PRNGKey(1), x.shape, jnp.float32)
    (gx,) = vjp_fn(g)
    gx = jax.block_until_ready(gx)
    expected = jnp.float32(-grl.coeff()) * g
    assert jnp.allclose(gx, expected, rtol=1e-6, atol=1e-6)

    print("KERNEL_OK")
</pallas_src>

<mosaic_0001>
module attributes {stable_mosaic.version = 11 : i64} {
  func.func @_grl_fwd_copy_kernel(%arg0: memref<2x4x16x16xf32, #tpu.memory_space<any>>, %arg1: memref<2x4x16x16xf32, #tpu.memory_space<any>>, %arg2: memref<!tpu.dma_semaphore, #tpu.memory_space<semaphore_mem>>) attributes {dimension_semantics = [], scalar_prefetch = 0 : i64, scratch_operands = 1 : i64, tpu.core_type = #tpu.core_type<tc>} {
    tpu.enqueue_dma source(%arg0 : memref<2x4x16x16xf32, #tpu.memory_space<any>>) target(%arg1 : memref<2x4x16x16xf32, #tpu.memory_space<any>>) target_semaphore(%arg2 : memref<!tpu.dma_semaphore, #tpu.memory_space<semaphore_mem>>)
    tpu.wait_dma2 semaphore(%arg2 : memref<!tpu.dma_semaphore, #tpu.memory_space<semaphore_mem>>) src(%arg0 : memref<2x4x16x16xf32, #tpu.memory_space<any>>) dst(%arg1 : memref<2x4x16x16xf32, #tpu.memory_space<any>>)
    return
  }
}

</mosaic_0001>

<bundles_post_ra>
// kernel: tpu_custom_call.1
= control target key start
LH: loop header
LB: loop body
LE: loop exit
PB: predicated region body
PF: predicated region fallthrough
CT: control target
= control target key end

     0   :  { %s36_s6 = smov [#allocation2]   ;;  %s37_s7 = smov [#allocation3]   ;;  %s55_s0 = inlined_call_operand.hbm [shape: f32[2,4,16,16], index: 0, kind: input, shape index: {}]   ;;  %s56_s1 = inlined_call_operand.hbm [shape: f32[2,4,16,16], index: 1, kind: output, shape index: {}]  }
   0x1   :  { %s38_s8 = smov 0  }
   0x2   :  { %18 = dma.general %s55_s0, 2048, %s56_s1, %s36_s6, %s37_s7, [#allocation4], %s38_s8, 0  }
   0x3   :  { %34 = dma.done.wait [#allocation2], 2048 }
   0x4   :  { %35 = vsyncadd [#allocation2], 4294965248 }
   0x5   :  { %24 = vsyncmov [#allocation2] }
   0x8   :  { %s25_s13 = vpop.sfrf %24 }
   0x9   :  { %p30_p0 = scmp.ne.s32.totalorder %s25_s13, 0 }
   0xb   :  { %29 = shalt.err (%p30_p0)  }

</bundles_post_ra>
